<compile_context>
chip_gen: v6e
topology: v6e:2x2x1
jax: 0.10.0
libtpu: 0.0.40
codegen_flags: <defaults>
</compile_context>

<pallas_src>
import math

import jax
import jax.numpy as jnp
import numpy as np
from jax.experimental import pallas as pl
from jax.experimental.pallas import tpu as pltpu


def _drop_path_kernel(x_ref, scale_ref, o_ref):
    # scale_ref holds the per-sample keep/drop scale replicated across 128
    # lanes; column 0 gives a (TB, 1) vector broadcast over the whole tile.
    scale = scale_ref[:, 0:1]
    o_ref[...] = (x_ref[...] * scale).astype(o_ref.dtype)


def _target_tile_bytes():
    """Per-generation tile byte target (bigger tiles amortize the ~0.35us/step cost)."""
    try:
        kind = jax.devices()[0].device_kind.lower()
    except Exception:
        kind = ""
    if "v5" in kind:
        return 3 * 1024 * 1024
    if "v6" in kind:
        return 4 * 1024 * 1024
    # v7x and newer: fastest HBM, so per-step overhead dominates sooner.
    return 6 * 1024 * 1024


def _choose_tiles(B, F, itemsize, target_bytes):
    """Pick (TB, TF) obeying the (8,128)-block rule, preferring full-row tiles."""
    tb, tf = B, F

    # 1) Shrink the batch tile first (stay a multiple of 8, or the full extent).
    if B % 8 == 0:
        while tb % 16 == 0 and tb * tf * itemsize > target_bytes:
            tb //= 2

    # 2) Only split the feature axis if even a short row-block exceeds the budget.
    if F % 128 == 0:
        while tf % 256 == 0 and (tf // 2) >= 512 and tb * tf * itemsize > target_bytes:
            tf //= 2

    # 3) Guarantee >= 2 grid blocks along a parallel axis so v7x's two
    #    TensorCores both get work (no-op on single-TC v5e/v6e).
    if (B // tb) * (F // tf) < 2:
        if tf == F and F % 256 == 0:
            tf = F // 2
        elif tb == B and B % 16 == 0:
            tb = B // 2

    return tb, tf


def drop_path_pallas(x, drop_prob: float, *, seed: int = 0, training: bool = True):
    """Pallas implementation of drop_path(x, drop_prob, training)."""
    if drop_prob == 0.0 or not training:
        return x
    if drop_prob >= 1.0:
        # keep_prob == 0: every sample is dropped; avoid the divide-by-zero.
        return jnp.zeros_like(x)
    keep_prob = 1.0 - drop_prob

    B = x.shape[0]
    F = math.prod(x.shape[1:])
    xf = x.reshape(B, F)
    itemsize = jnp.dtype(x.dtype).itemsize

    # Pad the feature axis to a multiple of 128 so tiles stay lane-dense and
    # the tile chooser can always split it if VMEM pressure requires it.
    Fp = F
    if F % 128 != 0:
        Fp = ((F + 127) // 128) * 128
        xf = jnp.pad(xf, ((0, 0), (0, Fp - F)))

    # Per-sample mask, same recipe as the PyTorch reference:
    #   random_tensor = floor(keep_prob + rand(B));  out = x / keep_prob * random_tensor
    u = jax.random.uniform(jax.random.PRNGKey(seed), (B,), dtype=jnp.float32)
    scale = jnp.floor(keep_prob + u) / keep_prob
    # Keep the scale in f32 for sub-16-bit inputs; otherwise multiply natively.
    scale_dtype = x.dtype if itemsize >= 2 else jnp.float32
    scale = scale.astype(scale_dtype)
    # Replicate across 128 lanes so the kernel sees a lane-dense (TB, 128) block.
    scale2d = jnp.broadcast_to(scale[:, None], (B, 128))

    target_bytes = _target_tile_bytes()
    tb, tf = _choose_tiles(B, Fp, itemsize, target_bytes)
    grid = (B // tb, Fp // tf)

    out = pl.pallas_call(
        _drop_path_kernel,
        out_shape=jax.ShapeDtypeStruct((B, Fp), x.dtype),
        grid=grid,
        in_specs=[
            pl.BlockSpec((tb, tf), lambda i, j: (i, j)),
            # Block index along j is constant -> not re-DMA'd across the feature axis.
            pl.BlockSpec((tb, 128), lambda i, j: (i, 0)),
        ],
        out_specs=pl.BlockSpec((tb, tf), lambda i, j: (i, j)),
        compiler_params=pltpu.CompilerParams(
            dimension_semantics=("parallel", "parallel"),
            # Double-buffered in + out tiles at the largest (v7x) target stay
            # well inside this; explicit so large tiles don't trip the default
            # scoped-VMEM limit.
            vmem_limit_bytes=48 * 1024 * 1024,
        ),
    )(xf, scale2d)

    if Fp != F:
        out = out[:, :F]
    return out.reshape(x.shape)

# TODO(synk): optional further win — skip the input DMA entirely for dropped
# samples via PrefetchScalarGridSpec + pl.when-gated manual copies.


class DropPath:
    """Mirror of the PyTorch DropPath module (forward only)."""

    def __init__(self, drop_prob=None):
        self.drop_prob = drop_prob if drop_prob is not None else 0.0
        self.training = True

    def __call__(self, x, *, seed: int = 0):
        return drop_path_pallas(x, self.drop_prob, seed=seed, training=self.training)


if __name__ == "__main__":
    key = jax.random.PRNGKey(0)
    B, C, H, W = 2, 4, 16, 16
    x = jax.random.normal(key, (B, C, H, W), dtype=jnp.float32)

    drop_prob = 0.5
    keep_prob = 1.0 - drop_prob
    module = DropPath(drop_prob)

    # Training path: per-sample stochastic depth (mask drawn outside, applied in-kernel).
    y = jax.block_until_ready(module(x, seed=1234))

    x_np = np.asarray(x)
    y_np = np.asarray(y)

    # Sanity check: every sample is either zeroed out or scaled by 1/keep_prob.
    for b in range(B):
        is_dropped = np.allclose(y_np[b], 0.0, atol=1e-6)
        is_kept = np.allclose(y_np[b], x_np[b] / keep_prob, rtol=1e-5, atol=1e-5)
        assert is_dropped or is_kept, f"sample {b}: not a valid drop-path output"

    # Cross-check against a pure-JAX reference using the same RNG draw.
    u = jax.random.uniform(jax.random.PRNGKey(1234), (B,), dtype=jnp.float32)
    ref = x * (jnp.floor(keep_prob + u) / keep_prob).reshape(B, 1, 1, 1)
    assert np.allclose(y_np, np.asarray(ref), rtol=1e-5, atol=1e-6)

    # Non-128-divisible feature extent (exercises the padding path).
    x_odd = jax.random.normal(jax.random.PRNGKey(2), (B, 3, 5, 7), dtype=jnp.float32)
    y_odd = jax.block_until_ready(drop_path_pallas(x_odd, drop_prob, seed=7, training=True))
    u_odd = jax.random.uniform(jax.random.PRNGKey(7), (B,), dtype=jnp.float32)
    ref_odd = x_odd * (jnp.floor(keep_prob + u_odd) / keep_prob).reshape(B, 1, 1, 1)
    assert np.allclose(np.asarray(y_odd), np.asarray(ref_odd), rtol=1e-5, atol=1e-6)

    # drop_prob == 1.0 must yield all zeros (no NaN/Inf).
    y_full = jax.block_until_ready(drop_path_pallas(x, 1.0, seed=3, training=True))
    assert np.allclose(np.asarray(y_full), 0.0)

    # Eval path (training=False) must be identity.
    module.training = False
    y_eval = jax.block_until_ready(module(x, seed=1234))
    assert np.allclose(np.asarray(y_eval), x_np)

    print("KERNEL_OK")
</pallas_src>

<mosaic_0001>
module attributes {stable_mosaic.version = 11 : i64} {
  func.func @_drop_path_kernel(%arg0: i32, %arg1: i32, %arg2: memref<2x512xf32, #tpu.memory_space<vmem>>, %arg3: memref<2x128xf32, #tpu.memory_space<vmem>>, %arg4: memref<2x512xf32, #tpu.memory_space<vmem>>) attributes {dimension_semantics = [#tpu.dimension_semantics<parallel>, #tpu.dimension_semantics<parallel>], iteration_bounds = array<i64: 1, 2>, scalar_prefetch = 0 : i64, scratch_operands = 0 : i64, tpu.core_type = #tpu.core_type<tc>, window_params = [{transform_indices = @transform_0, window_bounds = array<i64: 2, 512>}, {transform_indices = @transform_1, window_bounds = array<i64: 2, 128>}, {transform_indices = @transform_2, window_bounds = array<i64: 2, 512>}]} {
    %c0 = arith.constant 0 : index
    %c0_0 = arith.constant 0 : index
    %0 = vector.load %arg3[%c0, %c0_0] : memref<2x128xf32, #tpu.memory_space<vmem>>, vector<2x1xf32>
    %c0_1 = arith.constant 0 : index
    %c0_2 = arith.constant 0 : index
    %1 = vector.load %arg2[%c0_1, %c0_2] : memref<2x512xf32, #tpu.memory_space<vmem>>, vector<2x512xf32>
    %2 = vector.broadcast %0 : vector<2x1xf32> to vector<2x512xf32>
    %3 = arith.mulf %1, %2 : vector<2x512xf32>
    %c0_3 = arith.constant 0 : index
    %c0_4 = arith.constant 0 : index
    %4 = vector.load %arg4[%c0_3, %c0_4] : memref<2x512xf32, #tpu.memory_space<vmem>>, vector<2x512xf32>
    tpu.vector_store %arg4[%c0_3, %c0_4], %3 {strides = array<i32>} : memref<2x512xf32, #tpu.memory_space<vmem>>, vector<2x512xf32>,
    return
  }
  func.func @transform_0(%arg0: i32, %arg1: i32) -> (i32, i32) {
    %c0_i32 = arith.constant 0 : i32
    return %arg0, %arg1 : i32, i32
  }
  func.func @transform_1(%arg0: i32, %arg1: i32) -> (i32, i32) {
    %c0_i32 = arith.constant 0 : i32
    %c0_i32_0 = arith.constant 0 : i32
    return %arg0, %c0_i32 : i32, i32
  }
  func.func @transform_2(%arg0: i32, %arg1: i32) -> (i32, i32) {
    %c0_i32 = arith.constant 0 : i32
    return %arg0, %arg1 : i32, i32
  }
}

</mosaic_0001>

<bundles_post_ra>
// kernel: tpu_custom_call.1
= control target key start
LH: loop header
LB: loop body
LE: loop exit
PB: predicated region body
PF: predicated region fallthrough
CT: control target
= control target key end

     0   :  { %7 = vsyncpa [#allocation3], 0  ;;  %s745_s0 = inlined_call_operand.hbm [shape: f32[2,1024], index: 0, kind: input, shape index: {}]   ;;  %s746_s1 = inlined_call_operand.hbm [shape: f32[2,128], index: 1, kind: input, shape index: {}]   ;;  %s747_s2 = inlined_call_operand.hbm [shape: f32[2,1024], index: 2, kind: output, shape index: {}]  }
   0x1   :  { %9 = vsyncpa [#allocation3 + $0x1], 0 }
   0x2   :  { %10 = vsyncpa [#allocation6], 0 }
   0x3   :  { %11 = vsyncpa [#allocation4], 0 }
   0x4   :  { %13 = vsyncpa [#allocation4 + $0x1], 0  ;;  %s584_s9 = smov 0   ;;  %s586_s10 = smov 0  }
   0x5   :  { %s588_s11 = smov 0   ;;  %s590_s12 = smov 0  }
   0x6   :  { %s592_s13 = smov 0   ;;  %s594_s14 = smov 0  }
   0x7 LB: > { %s329_s15 = sadd.s32 4294967295, %s562_s14   ;;  %s330_s16 = sadd.s32 4294967294, %s562_s14   ;;  %s562_s14 = sphi %s594_s14, %s19_s14   ;;  %s558_s13 = sphi %s592_s13, %s764_s13   ;;  %s554_s12 = sphi %s590_s12, %s763_s12   ;;  %s550_s11 = sphi %s588_s11, %s762_s11   ;;  %s546_s10 = sphi %s586_s10, %s761_s10   ;;  %s542_s9 = sphi %s584_s9, %s760_s9  }
   0x8   : > { %p53_p0 = scmp.ne.s32.totalorder %s546_s10, %s542_s9  ;;  %p618_p1 = scmp.eq.s32.totalorder %s329_s15, 0 }
   0x9   : > { %p622_p2 = scmp.eq.s32.totalorder %s329_s15, 1  ;;  %p111_p3 = scmp.eq.s32.totalorder %s330_s16, 1 }
   0xa   : > { %p628_p4 = por %p618_p1, %p53_p0  ;;  %p331_p5 = scmp.ge.s32.totalorder %s562_s14, 1 }
   0xb   : > { %p633_p6 = por %p111_p3, %p53_p0  ;;  %p118_p7 = scmp.lt.s32.totalorder %s562_s14, 3 }
   0xc   : > { %s751_s19 = scalar_select %p628_p4, 1, 0 }
   0xd   : > { %s752_s20 = scalar_select %p633_p6, 1, 0 }
   0xe   : > { %p638_p8 = pnand %p331_p5, %p118_p7  ;;  %s564_s22 = smov [#allocation5]  }
   0xf   : > { %s133_s23 = sshll.u32 %s564_s22, 4  ;;  %s28_s25 = sadd.s32 1, %s558_s13  ;;  %s134_s23 = int_to_ptr.vmem [resolvable:$true] %s133_s23 }
  0x10   : > { %p356_p10 = pneg %p638_p8  ;;  %s40_s26 = sadd.s32 1, %s550_s11 }
  0x11   : > { %p29_p12 = scmp.ge.s32.totalorder %s28_s25, 2  ;;  %s435_s27 = scalar_lea.vmem %s134_s23, 32 }
  0x12   : > { %p647_p11 = pnand %p356_p10, %p618_p1  ;;  %p436_p0 = scmp.ne.s32.totalorder %s134_s23, %s435_s27 }
  0x13   : > { %p443_p7 = scmp.lt.s32.totalorder %s134_s23, %s134_s23  ;;  %p444_p6 = scmp.lt.s32.totalorder %s435_s27, %s435_s27 }
  0x14   : > { %p426_p13 = pneg %p647_p11 }
  0x15   : > { %p445_p9 = por %p444_p6, %p443_p7 }
  0x16   : > { %p438_p3 = pnand %p436_p0, %p426_p13 }
  0x18   : > { %p439_p5 = pneg %p438_p3 }
  0x1a   : > { %p446_p4 = pnand %p445_p9, %p439_p5 }
  0x1c   : > { %449 = shalt.err (!%p446_p4)
}
  0x1d   : > { %359 = dma.hbm_to_vmem [thread:$0]  (!%p647_p11), %s746_s1, 32, %s134_s23, [#allocation6]  }
  0x1e   : > { %s766_s25 = smov (%p29_p12, %s28_s25), 0  ;;  %p47_p6 = scmp.ne.s32.totalorder %s550_s11, %s546_s10 }
  0x1f   : > { %p48_p4 = scmp.eq.s32.totalorder %s562_s14, 0  ;;  %s36_s30 = ssub.s32 %s558_s13, %s766_s25 }
  0x20   : > { %p369_p9 = scmp.lt.s32.totalorder %s562_s14, 2  ;;  %p38_p10 = scmp.eq.s32.totalorder %s36_s30, 0 }
  0x21   : > { %p49_p13 = por %p48_p4, %p47_p6  ;;  %p670_p0 = por %p622_p2, %p47_p6 }
  0x22   : > { %s144_s4 = sand.u32 1, %s550_s11   ;;  %s346_s7 = sshll.u32 %s558_s13, 7 }
  0x23   : > { %s676_s5 = scalar_select %p38_p10, %s550_s11, %s40_s26  }
  0x24   : > { %s334_s6 = sshll.u32 %s144_s4, 3  ;;  %s156_s16 = scalar_lea.hbm %s745_s0, %s346_s7 }
  0x25   : > { %s148_s22 = scalar_lea.vmem [#allocation2], %s334_s6  ;;  %p682_p11 = pnand %p369_p9, %p49_p13 }
  0x26   : > { %s158_s23 = sshll.u32 %s148_s22, 4  ;;  %s145_s18 = scalar_lea.sflag [#allocation3], %s144_s4  ;;  %s159_s23 = int_to_ptr.vmem [resolvable:$true] %s158_s23 }
  0x27   : > { %p452_p2 = pneg %p682_p11  ;;  %s463_s27 = scalar_lea.vmem %s159_s23, 128 }
  0x28   : > { %p464_p12 = scmp.ne.s32.totalorder %s159_s23, %s463_s27  ;;  %s565_s26 = smov [#allocation2]  }
  0x29   : > { %s468_s28 = sshll.u32 %s565_s26, 4  ;;  %s469_s28 = int_to_ptr.vmem [resolvable:$false] %s468_s28 }
  0x2a   : > { %p466_p3 = pnand %p464_p12, %p452_p2  ;;  %s470_s29 = scalar_lea.vmem %s469_s28, 256 }
  0x2b   : > { %p471_p7 = scmp.lt.s32.totalorder %s159_s23, %s469_s28  ;;  %p472_p6 = scmp.lt.s32.totalorder %s470_s29, %s463_s27 }
  0x2c   : > { %p467_p5 = pneg %p466_p3 }
  0x2d   : > { %p473_p4 = por %p472_p6, %p471_p7 }
  0x2f   : > { %p474_p10 = pnand %p473_p4, %p467_p5 }
  0x31   : > { %477 = shalt.err (!%p474_p10)
}
  0x32   : > { %363 = dma.hbm_to_vmem [thread:$0]  (!%p682_p11), %s156_s16, 128, %s159_s23, %s145_s18  }
  0x33   : > { %167 = sbr.rel (%p638_p8) target bundleno = 202 (0xca), region = 28  ;;  %s693_s30 = sand.u32 (!%p638_p8), 1, %s546_s10  }
  0x34   : > { %s338_s4 = sshll.u32 (!%p638_p8), %s693_s30, 3  ;;  %s170_s6 = scalar_lea.sflag (!%p638_p8), [#allocation3], %s693_s30 }
  0x35   : > { %s173_s7 = scalar_lea.vmem (!%p638_p8), [#allocation2], %s338_s4  ;;  %p757_p9 = scmp.ne.s32.totalorder (!%p638_p8), %s751_s19, 0 }
  0x38   : > { %529 = dma.done.wait (%p757_p9), %s170_s6, 128  }
  0x39   : > { %531 = vsyncadd (%p757_p9), %s170_s6, 4294967168 }
  0x3a   : > { %533 = dma.done.wait (%p618_p1), [#allocation6], 32  }
  0x3b   : > { %535 = vsyncadd (%p618_p1), [#allocation6], 4294967264  ;;  %v566_v0 = vmov 0   ;;  %v200_v1 = vld [vmem:[#allocation5] sm:$0x3]  ;;  %v209_v4 = vlaneseq  ;;  %v201_v8 = vld [vmem:[%s173_s7] sm:$0xff] }
  0x3c   : > { %423 = vset.pattern.permute.xlu0 %v566_v0  ;;  %v567_v2 = vmov 269488144   ;;  %s347_s19 = sshll.u32 %s554_s12, 7  ;;  %s197_s21 = scalar_lea.vmem [#allocation7], %s338_s4 }
  0x3d   : > { %204 = vperm.xlu0 %423, %v200_v1   ;;  %v207_v3 = vunpack.c.l.s4 %v567_v2  ;;  %v210_v6 = vshrl.u32 %v209_v4, 7  ;;  %s233_s8 = sshll.u32 %s197_s21, 4  ;;  %s231_s16 = scalar_lea.hbm %s747_s2, %s347_s19  ;;  %s234_s8 = int_to_ptr.vmem [resolvable:$true] %s233_s8 }
  0x3e   : > { %s217_s22 = scalar_lea.sflag [#allocation4], %s693_s30  ;;  %s478_s23 = scalar_lea.vmem %s234_s8, 128 }
  0x3f   : > { %v208_v5 = vunpack.c.0.s8 %v207_v3  ;;  %p479_p1 = scmp.ne.s32.totalorder %s234_s8, %s478_s23  ;;  %s568_s24 = smov [#allocation7]  }
  0x40   : > { %s482_s18 = sshll.u32 %s568_s24, 4  ;;  %s483_s18 = int_to_ptr.vmem [resolvable:$false] %s482_s18 }
  0x41   : > { %v211_v7 = vsub.s32 %v208_v5, %v210_v6  ;;  %p480_p8 = pnand %p479_p1, %p670_p0  ;;  %s484_s12 = scalar_lea.vmem %s483_s18, 256 }
  0x42   : > { %p485_p11 = scmp.lt.s32.totalorder %s234_s8, %s483_s18  ;;  %p486_p2 = scmp.lt.s32.totalorder %s484_s12, %s478_s23 }
  0x43   : > { %p481_p13 = pneg %p480_p8 }
  0x44   : > { %p487_p12 = por %p486_p2, %p485_p11 }
  0x46   : > { %p488_p3 = pnand %p487_p12, %p481_p13 }
  0xb8   : > { %v205_v9 = vpop.permute.xlu0 %204 }
  0xb9   : > { %v212_v10 = vrot.slane %v205_v9, %v211_v7 }
  0xbb   : > { %v214_v11 = vmul.f32 %v212_v10, %v201_v8 }
  0xbd   : > { %215 = vst [vmem:[%s197_s21] sm:$0xff] %v214_v11 }
  0xbe   : > { %491 = shalt.err (!%p488_p3)
}
  0xbf   : > { %s492_s27 = scalar_lea.hbm %s231_s16, 128  ;;  %s496_s29 = scalar_lea.hbm %s747_s2, 256 }
  0xc0   : > { %p493_p5 = scmp.ne.s32.totalorder %s231_s16, %s492_s27  ;;  %p497_p4 = scmp.lt.s32.totalorder %s231_s16, %s747_s2 }
  0xc1   : > { %p498_p10 = scmp.lt.s32.totalorder %s496_s29, %s492_s27 }
  0xc2   : > { %p494_p7 = pnand %p493_p5, %p670_p0 }
  0xc3   : > { %p499_p9 = por %p498_p10, %p497_p4 }
  0xc4   : > { %p495_p6 = pneg %p494_p7 }
  0xc6   : > { %p500_p1 = pnand %p499_p9, %p495_p6 }
  0xc8   : > { %503 = shalt.err (!%p500_p1)
}
  0xc9   : > { %354 = dma.vmem_to_hbm [thread:$0]  (%p670_p0), %s234_s8, 128, %s231_s16, %s217_s22  }
  0xca PF: > { %s245_s6 = sand.u32 1, %s542_s9   ;;  %p758_p8 = scmp.ne.s32.totalorder %s752_s20, 0 }
  0xcb   : > { %p759_p13 = scmp.ge.s32.totalorder %s562_s14, 2  ;;  %s246_s7 = scalar_lea.sflag [#allocation4], %s245_s6 }
  0xcd   : > { %p365_p11 = pnand %p759_p13, %p758_p8 }
  0xcf   : > { %p366_p2 = pneg %p365_p11 }
  0xd1   : > { %537 = dma.done.wait (%p366_p2), %s246_s7, 128  }
  0xd2   : > { %539 = vsyncadd (%p366_p2), %s246_s7, 4294967168  ;;  %s19_s14 = sadd.s32 1, %s562_s14   ;;  %s760_s9 = smov %s546_s10 }
  0xd3   : > { %p16_p12 = scmp.ge.s32.totalorder %s19_s14, 4   ;;  %s761_s10 = smov %s550_s11 }
  0xd4   : > { %s762_s11 = smov %s676_s5  ;;  %s763_s12 = smov %s558_s13 }
  0xd5   : > { %s764_s13 = smov %s766_s25  ;;  %18 = sbr.rel (!%p16_p12) target bundleno = 7 (0x7), region = 78 }
  0xda   :  { %251 = vsyncpa [#allocation3], 1 }
  0xdb   :  { %253 = vsyncpa [#allocation3 + $0x1], 1 }
  0xdc   :  { %254 = vsyncpa [#allocation6], 1 }
  0xdd   :  { %255 = vsyncpa [#allocation4], 1 }
  0xde   :  { %257 = vsyncpa [#allocation4 + $0x1], 1 }

</bundles_post_ra>
